<compile_context>
chip_gen: v5e
topology: v5e:2x2
jax: 0.10.0
libtpu: 0.0.40
codegen_flags: <defaults>
</compile_context>

<pallas_src>
import jax
import jax.numpy as jnp
from jax.experimental import pallas as pl
from jax.experimental.pallas import tpu as pltpu


def _reconstructor_kernel(hs_ref, hh_ref, wt_ref, b_ref, o_ref):
    hs = hs_ref[...]                      # (tb, Hs)
    hh = hh_ref[...]                      # (tb, Hh)
    Hs = hs.shape[1]
    # Two MXU contractions against static (sublane-aligned) views of the
    # resident W.T -- avoids materializing a (tb, 2H) concat copy in VMEM.
    acc = jnp.dot(hs, wt_ref[:Hs, :], preferred_element_type=jnp.float32)
    acc = acc + jnp.dot(hh, wt_ref[Hs:, :], preferred_element_type=jnp.float32)
    acc = acc + b_ref[...]                # (1, d_in) broadcasts over rows, f32
    o_ref[...] = jnp.maximum(acc, 0.0).astype(o_ref.dtype)


def _round_up(x, m):
    return ((x + m - 1) // m) * m


def feature_reconstructor(h_specific, h_share, weight_t, bias, *, tb=None,
                          small_batch_fallback=256, vmem_limit_bytes=None):
    """Fused relu(cat([h_specific, h_share], 1) @ W.T + b).

    h_specific: (B, Hs), h_share: (B, Hh)   -- any dtype (f32 or bf16)
    weight_t:   (Hs+Hh, d_in)               -- W.T, pre-transposed ONCE
    bias:       (d_in,)                      -- kept in f32 for VPU math
    """
    B, Hs = h_specific.shape
    Bh, Hh = h_share.shape
    assert B == Bh
    K, d_in = weight_t.shape
    assert K == Hs + Hh
    dtype = h_specific.dtype

    # Tiny batches: kernel launch + one grid step dominates -> plain XLA path.
    if B < small_batch_fallback:
        combined = jnp.concatenate([h_specific, h_share], axis=1)
        acc = jnp.dot(combined, weight_t, preferred_element_type=jnp.float32)
        return jnp.maximum(acc + bias.astype(jnp.float32), 0.0).astype(dtype)

    itemsize = jnp.dtype(dtype).itemsize
    b_align = {4: 8, 2: 16, 1: 32}.get(itemsize, 8)

    # Big default batch tile (HBM/overhead-bound kernel), capped so the grid
    # has at least 2 blocks (v7x has 2 TCs; the grid is the only sharding
    # mechanism), and kept a multiple of the sublane packing for this dtype.
    if tb is None:
        tb = 2048 if itemsize <= 2 else 1024
    tb = min(tb, _round_up(pl.cdiv(B, 2), b_align))
    tb = max(b_align, (tb // b_align) * b_align)

    num_blocks = pl.cdiv(B, tb)           # last block may be ragged (masked)

    b2 = bias.astype(jnp.float32).reshape(1, d_in)

    w_itemsize = jnp.dtype(weight_t.dtype).itemsize
    cost = pl.CostEstimate(
        flops=2 * B * K * d_in,
        transcendentals=0,
        bytes_accessed=(B * (Hs + Hh) + B * d_in) * itemsize
                       + K * d_in * w_itemsize + d_in * 4,
    )

    return pl.pallas_call(
        _reconstructor_kernel,
        out_shape=jax.ShapeDtypeStruct((B, d_in), dtype),
        grid_spec=pltpu.PrefetchScalarGridSpec(
            num_scalar_prefetch=0,
            grid=(num_blocks,),
            in_specs=[
                pl.BlockSpec((tb, Hs), lambda i: (i, 0)),    # h_specific tile
                pl.BlockSpec((tb, Hh), lambda i: (i, 0)),    # h_share tile
                # Resident operands (constant index_map).  For large d_in/K on
                # v7x (64 MiB VMEM), add pipeline_mode=pl.Buffered(1) here and
                # a "parallel" grid axis over d_in.
                pl.BlockSpec((K, d_in), lambda i: (0, 0)),   # W.T (resident)
                pl.BlockSpec((1, d_in), lambda i: (0, 0)),   # bias (resident)
            ],
            out_specs=pl.BlockSpec((tb, d_in), lambda i: (i, 0)),
        ),
        compiler_params=pltpu.CompilerParams(
            dimension_semantics=("parallel",),   # shard batch across TCs (v7x)
            vmem_limit_bytes=vmem_limit_bytes,
        ),
        cost_estimate=cost,
    )(h_specific, h_share, weight_t, b2)


def reference(h_specific, h_share, weight, bias):
    combined = jnp.concatenate([h_specific, h_share], axis=1)
    return jnp.maximum(combined @ weight.T + bias, 0.0)


if __name__ == "__main__":
    # Module defaults: d_in=128, h_specific_dim=128, h_share_dim=128.
    d_in, h_spec_dim, h_share_dim = 128, 128, 128
    # B above the small-batch fallback and NOT a multiple of the tile:
    # exercises the Pallas path with 2 grid blocks and a ragged last block.
    B = 300

    key = jax.random.PRNGKey(0)
    k_hs, k_hh, k_w, k_b = jax.random.split(key, 4)

    h_specific = jax.random.normal(k_hs, (B, h_spec_dim), dtype=jnp.float32)
    h_share = jax.random.normal(k_hh, (B, h_share_dim), dtype=jnp.float32)

    # Deterministic nn.Linear-style init: U(-1/sqrt(fan_in), 1/sqrt(fan_in)).
    fan_in = h_spec_dim + h_share_dim
    bound = 1.0 / (fan_in ** 0.5)
    weight = jax.random.uniform(k_w, (d_in, fan_in), dtype=jnp.float32,
                                minval=-bound, maxval=bound)
    bias = jax.random.uniform(k_b, (d_in,), dtype=jnp.float32,
                              minval=-bound, maxval=bound)

    # One-time parameter prep (lives at module init, NOT per forward call).
    weight_t = jnp.asarray(weight.T)                    # (2H, d_in), f32
    weight_t_bf16 = weight_t.astype(jnp.bfloat16)       # optional bf16 copy

    ref = reference(h_specific, h_share, weight, bias)

    # f32 Pallas path (2 blocks, ragged last block, no wrapper-side pad).
    out = feature_reconstructor(h_specific, h_share, weight_t, bias)
    out = jax.block_until_ready(out)
    assert out.shape == (B, d_in)
    assert jnp.allclose(out, ref, atol=1e-5, rtol=1e-5)

    # bf16 operands (halves HBM bytes on v6e/v7x); f32 MXU accumulation and
    # f32 bias/ReLU inside the kernel, so only operand-rounding error remains.
    out_bf16 = feature_reconstructor(h_specific.astype(jnp.bfloat16),
                                     h_share.astype(jnp.bfloat16),
                                     weight_t_bf16, bias)
    out_bf16 = jax.block_until_ready(out_bf16)
    assert jnp.allclose(out_bf16.astype(jnp.float32), ref, atol=5e-2, rtol=5e-2)

    # Tiny batch goes through the plain-XLA small-batch fallback.
    out_small = feature_reconstructor(h_specific[:12], h_share[:12],
                                      weight_t, bias)
    out_small = jax.block_until_ready(out_small)
    assert jnp.allclose(out_small, ref[:12], atol=1e-5, rtol=1e-5)

    print("KERNEL_OK")
</pallas_src>

<mosaic_0001>
module attributes {stable_mosaic.version = 11 : i64} {
  func.func @_reconstructor_kernel(%arg0: i32, %arg1: memref<152x128xf32, #tpu.memory_space<vmem>>, %arg2: memref<152x128xf32, #tpu.memory_space<vmem>>, %arg3: memref<256x128xf32, #tpu.memory_space<vmem>>, %arg4: memref<1x128xf32, #tpu.memory_space<vmem>>, %arg5: memref<152x128xf32, #tpu.memory_space<vmem>>) attributes {dimension_semantics = [#tpu.dimension_semantics<parallel>], iteration_bounds = array<i64: 2>, scalar_prefetch = 0 : i64, scratch_operands = 0 : i64, tpu.core_type = #tpu.core_type<tc>, window_params = [{transform_indices = @transform_0, window_bounds = array<i64: 152, 128>}, {transform_indices = @transform_1, window_bounds = array<i64: 152, 128>}, {pipeline_mode = #tpu.pipeline_mode<synchronous>, transform_indices = @transform_2, window_bounds = array<i64: 256, 128>}, {pipeline_mode = #tpu.pipeline_mode<synchronous>, transform_indices = @transform_3, window_bounds = array<i64: 1, 128>}, {transform_indices = @transform_4, window_bounds = array<i64: 152, 128>}]} {
    %c0 = arith.constant 0 : index
    %c0_0 = arith.constant 0 : index
    %0 = vector.load %arg1[%c0, %c0_0] : memref<152x128xf32, #tpu.memory_space<vmem>>, vector<152x128xf32>
    %c0_1 = arith.constant 0 : index
    %c0_2 = arith.constant 0 : index
    %1 = vector.load %arg2[%c0_1, %c0_2] : memref<152x128xf32, #tpu.memory_space<vmem>>, vector<152x128xf32>
    %c0_3 = arith.constant 0 : index
    %c0_4 = arith.constant 0 : index
    %2 = vector.load %arg3[%c0_3, %c0_4] : memref<256x128xf32, #tpu.memory_space<vmem>>, vector<128x128xf32>
    %cst = arith.constant dense<0.000000e+00> : vector<152x128xf32>
    %3 = tpu.matmul %0, %2, %cst {dimension_numbers = #tpu.dot_dimension_numbers<[1], [0], [0], [1], [0, 0, 1, 1], [], []>} : vector<152x128xf32>, vector<128x128xf32>, vector<152x128xf32> -> vector<152x128xf32>
    %c128 = arith.constant 128 : index
    %c0_5 = arith.constant 0 : index
    %4 = vector.load %arg3[%c128, %c0_5] : memref<256x128xf32, #tpu.memory_space<vmem>>, vector<128x128xf32>
    %cst_6 = arith.constant dense<0.000000e+00> : vector<152x128xf32>
    %5 = tpu.matmul %1, %4, %cst_6 {dimension_numbers = #tpu.dot_dimension_numbers<[1], [0], [0], [1], [0, 0, 1, 1], [], []>} : vector<152x128xf32>, vector<128x128xf32>, vector<152x128xf32> -> vector<152x128xf32>
    %6 = arith.addf %3, %5 : vector<152x128xf32>
    %c0_7 = arith.constant 0 : index
    %c0_8 = arith.constant 0 : index
    %7 = vector.load %arg4[%c0_7, %c0_8] : memref<1x128xf32, #tpu.memory_space<vmem>>, vector<1x128xf32>
    %8 = vector.broadcast %7 : vector<1x128xf32> to vector<152x128xf32>
    %9 = arith.addf %6, %8 : vector<152x128xf32>
    %cst_9 = arith.constant 0.000000e+00 : f32
    %10 = vector.broadcast %cst_9 : f32 to vector<152x128xf32>
    %11 = arith.maximumf %9, %10 : vector<152x128xf32>
    %c0_10 = arith.constant 0 : index
    %c0_11 = arith.constant 0 : index
    %12 = vector.load %arg5[%c0_10, %c0_11] : memref<152x128xf32, #tpu.memory_space<vmem>>, vector<152x128xf32>
    tpu.vector_store %arg5[%c0_10, %c0_11], %11 {strides = array<i32>} : memref<152x128xf32, #tpu.memory_space<vmem>>, vector<152x128xf32>,
    return
  }
  func.func @transform_0(%arg0: i32) -> (i32, i32) {
    %c0_i32 = arith.constant 0 : i32
    %c0_i32_0 = arith.constant 0 : i32
    return %arg0, %c0_i32 : i32, i32
  }
  func.func @transform_1(%arg0: i32) -> (i32, i32) {
    %c0_i32 = arith.constant 0 : i32
    %c0_i32_0 = arith.constant 0 : i32
    return %arg0, %c0_i32 : i32, i32
  }
  func.func @transform_2(%arg0: i32) -> (i32, i32) {
    %c0_i32 = arith.constant 0 : i32
    %c0_i32_0 = arith.constant 0 : i32
    %c0_i32_1 = arith.constant 0 : i32
    return %c0_i32, %c0_i32_0 : i32, i32
  }
  func.func @transform_3(%arg0: i32) -> (i32, i32) {
    %c0_i32 = arith.constant 0 : i32
    %c0_i32_0 = arith.constant 0 : i32
    %c0_i32_1 = arith.constant 0 : i32
    return %c0_i32, %c0_i32_0 : i32, i32
  }
  func.func @transform_4(%arg0: i32) -> (i32, i32) {
    %c0_i32 = arith.constant 0 : i32
    %c0_i32_0 = arith.constant 0 : i32
    return %arg0, %c0_i32 : i32, i32
  }
}

</mosaic_0001>

<bundles_post_ra>
// kernel: tpu_custom_call.1
= control target key start
LH: loop header
LB: loop body
LE: loop exit
PB: predicated region body
PF: predicated region fallthrough
CT: control target
= control target key end

     0   :  { %s1257_s0 = inlined_call_operand.hbm [shape: f32[300,128], index: 0, kind: input, shape index: {}]   ;;  %s1258_s1 = inlined_call_operand.hbm [shape: f32[300,128], index: 1, kind: input, shape index: {}]   ;;  %s1259_s2 = inlined_call_operand.hbm [shape: f32[256,128], index: 2, kind: input, shape index: {}]   ;;  %s1260_s3 = inlined_call_operand.vmem [shape: f32[1,128], index: 3, kind: input, shape index: {}]   ;;  %s1261_s4 = inlined_call_operand.hbm [shape: f32[300,128], index: 4, kind: output, shape index: {}]  }
   0x1   :  { %1267 = sst [smem:[#allocation15_spill]] %s1259_s2 }
   0x2   :  { %9 = vsyncpa [#allocation3], 0 }
   0x3   :  { %11 = vsyncpa [#allocation3 + $0x1], 0 }
   0x4   :  { %12 = vsyncpa [#allocation6], 0 }
   0x5   :  { %14 = vsyncpa [#allocation6 + $0x1], 0 }
   0x6   :  { %15 = vsyncpa [#allocation4], 0 }
   0x7   :  { %17 = vsyncpa [#allocation4 + $0x1], 0  ;;  %s991_s15 = smov 0   ;;  %s993_s16 = smov 0  }
   0x8   :  { %s995_s17 = smov 0   ;;  %s997_s18 = smov 0  }
   0x9 LB: > { %1268 = sst [smem:[#allocation13_spill]] %s955_s17  ;;  %s1012_s19 = sadd.s32 4294967295, %s959_s18   ;;  %s959_s18 = sphi %s997_s18, %s1283_s18   ;;  %s955_s17 = sphi %s995_s17, %s1280_s17   ;;  %s951_s16 = sphi %s993_s16, %s1282_s16   ;;  %s947_s15 = sphi %s991_s15, %s1281_s15  }
   0xa   : > { %s679_s20 = sadd.s32 4294967294, %s959_s18   ;;  %p43_p0 = scmp.ne.s32.totalorder %s951_s16, %s947_s15 }
   0xb   : > { %p44_p1 = scmp.eq.s32.totalorder %s1012_s19, 0  ;;  %p135_p2 = scmp.eq.s32.totalorder %s1012_s19, 1 }
   0xc   : > { %p141_p3 = scmp.eq.s32.totalorder %s679_s20, 1  ;;  %p680_p5 = scmp.ge.s32.totalorder %s959_s18, 1 }
   0xd   : > { %p1021_p4 = por %p44_p1, %p43_p0  ;;  %p148_p7 = scmp.lt.s32.totalorder %s959_s18, 3 }
   0xe   : > { %p1026_p6 = por %p141_p3, %p43_p0  ;;  %s1271_s2 = sld [smem:[#allocation15_spill]] }
   0xf   : > { %p1034_p8 = pnand %p680_p5, %p148_p7  ;;  %s961_s27 = smov [#allocation7]  }
  0x10   : > { %s161_s28 = sshll.u32 %s961_s27, 4  ;;  %s1044_s29 = sadd.s32 1, %s959_s18   ;;  %s162_s28 = int_to_ptr.vmem [resolvable:$true] %s161_s28 }
  0x11   : > { %p738_p9 = pneg %p1034_p8  ;;  %s1262_s30 = smov 128  }
  0x12   : > { %s1264_s5 = smov 8   ;;  %s27_s6 = ssub.s32 %s959_s18, %s1044_s29 }
  0x13   : > { %p739_p10 = pnand %p738_p9, %p44_p1  ;;  %s30_s7 = sadd.s32 1, %s955_s17 }
  0x14   : > { %s159_s25 = sshll.u32 %s1271_s2, 4  ;;  %p28_p12 = scmp.eq.s32.totalorder %s27_s6, 0  ;;  %s160_s25 = int_to_ptr.hbm [resolvable:$true] %s159_s25 }
  0x15   : > { %741 = dma.hbm_to_vmem [thread:$0]  (!%p739_p10), %s160_s25, 4096, %s162_s28, [#allocation6], %s1262_s30, %s1262_s30, %s1264_s5  }
  0x16   : > { %p37_p13 = scmp.ne.s32.totalorder %s955_s17, %s951_s16  ;;  %p38_p0 = scmp.eq.s32.totalorder %s959_s18, 0 }
  0x17   : > { %p754_p3 = scmp.lt.s32.totalorder %s959_s18, 2  ;;  %s178_s10 = sand.u32 1, %s955_s17  }
  0x18   : > { %s1057_s8 = scalar_select %p28_p12, %s955_s17, %s30_s7  }
  0x19   : > { %p39_p5 = por %p38_p0, %p37_p13  ;;  %p1061_p7 = por %p135_p2, %p37_p13 }
  0x1a   : > { %1273 = sst [smem:[#allocation14_spill]] %s1057_s8  ;;  %s690_s11 = smul.u32 152, %s959_s18 }
  0x1b   : > { %s725_s12 = smul.u32 152, %s178_s10  ;;  %p1070_p9 = pnand %p754_p3, %p39_p5 }
  0x1c   : > { %s187_s20 = scalar_lea.hbm %s1257_s0, %s690_s11  ;;  %s179_s28 = scalar_lea.sflag [#allocation3], %s178_s10 }
  0x1d   : > { %s188_s24 = sshll.u32 %s187_s20, 4  ;;  %s182_s25 = scalar_lea.vmem [#allocation2], %s725_s12  ;;  %s189_s24 = int_to_ptr.hbm [resolvable:$true] %s188_s24 }
  0x1e   : > { %s190_s27 = sshll.u32 %s182_s25, 4  ;;  %s825_s6 = sshra.s32 %s189_s24, 4  ;;  %s191_s27 = int_to_ptr.vmem [resolvable:$true] %s190_s27  ;;  %s826_s6 = int_to_ptr.hbm [resolvable:$true] %s825_s6 }
  0x1f   : > { %s827_s7 = scalar_lea.hbm %s826_s6, 152  ;;  %p829_p10 = pneg %p1070_p9 }
  0x20   : > { %p828_p2 = scmp.ne.s32.totalorder %s826_s6, %s827_s7  ;;  %s832_s30 = scalar_lea.hbm %s1257_s0, 304 }
  0x21   : > { %p833_p0 = scmp.lt.s32.totalorder %s826_s6, %s1257_s0  ;;  %p834_p3 = scmp.lt.s32.totalorder %s832_s30, %s827_s7 }
  0x22   : > { %p830_p12 = pnand %p829_p10, %p828_p2 }
  0x23   : > { %p835_p5 = por %p834_p3, %p833_p0 }
  0x24   : > { %p831_p13 = pneg %p830_p12 }
  0x26   : > { %p836_p11 = pnand %p835_p5, %p831_p13 }
  0x28   : > { %839 = shalt.err (!%p836_p11)
}
  0x29   : > { %s1276_s10 = smov 8   ;;  %s1277_s25 = smov 128  }
  0x2a   : > { %745 = dma.hbm_to_vmem [thread:$0]  (!%p1070_p9), %s189_s24, 2432, %s191_s27, %s179_s28, %s1277_s25, %s1277_s25, %s1276_s10  }
  0x2b   : > { %s200_s2 = sand.u32 1, %s959_s18   ;;  %s209_s14 = scalar_lea.hbm %s1258_s1, %s690_s11 }
  0x2c   : > { %s210_s17 = sshll.u32 %s209_s14, 4  ;;  %s204_s5 = scalar_lea.vmem [#allocation5], %s725_s12  ;;  %s211_s17 = int_to_ptr.hbm [resolvable:$true] %s210_s17 }
  0x2d   : > { %s212_s6 = sshll.u32 %s204_s5, 4  ;;  %s201_s30 = scalar_lea.sflag [#allocation6], %s200_s2  ;;  %s213_s6 = int_to_ptr.vmem [resolvable:$true] %s212_s6 }
  0x2e   : > { %s855_s7 = sshra.s32 %s211_s17, 4  ;;  %s862_s28 = scalar_lea.hbm %s1258_s1, 304  ;;  %s856_s7 = int_to_ptr.hbm [resolvable:$true] %s855_s7 }
  0x2f   : > { %s857_s20 = scalar_lea.hbm %s856_s7, 152  ;;  %p863_p13 = scmp.lt.s32.totalorder %s856_s7, %s1258_s1 }
  0x30   : > { %p858_p11 = scmp.ne.s32.totalorder %s856_s7, %s857_s20  ;;  %p864_p0 = scmp.lt.s32.totalorder %s862_s28, %s857_s20 }
  0x32   : > { %p860_p2 = pnand %p858_p11, %p829_p10  ;;  %p865_p3 = por %p864_p0, %p863_p13 }
  0x34   : > { %p861_p12 = pneg %p860_p2 }
  0x36   : > { %p866_p5 = pnand %p865_p3, %p861_p12 }
  0x38   : > { %869 = shalt.err (!%p866_p5)
}
  0x39   : > { %748 = dma.hbm_to_vmem [thread:$0]  (!%p1070_p9), %s211_s17, 2432, %s213_s6, %s201_s30, %s1277_s25, %s1277_s25, %s1276_s10  }
  0x3a   : > { %224 = sbr.rel (%p1034_p8) target bundleno = 315 (0x13b), region = 36  ;;  %s1111_s2 = sand.u32 (!%p1034_p8), 1, %s951_s16  }
  0x3b   : > { %s1114_s12 = smul.u32 (!%p1034_p8), 152, %s1111_s2  ;;  %s227_s13 = scalar_lea.sflag (!%p1034_p8), [#allocation3], %s1111_s2 }
  0x3d   : > { %s1118_s14 = scalar_lea.vmem (!%p1034_p8), [#allocation2], %s1114_s12 }
  0x3f   : > { %930 = dma.done.wait (%p1021_p4), %s227_s13, 2432  }
  0x40   : > { %932 = vsyncadd (%p1021_p4), %s227_s13, 4294964864  ;;  %s236_s17 = sand.u32 1, %s1012_s19   ;;  %s1126_s23 = scalar_lea.vmem [#allocation5], %s1114_s12 }
  0x41   : > { %s237_s26 = scalar_lea.sflag [#allocation6], %s236_s17 }
  0x42   : > { %934 = dma.done.wait (%p1021_p4), %s237_s26, 2432  }
  0x43   : > { %936 = vsyncadd (%p1021_p4), %s237_s26, 4294964864 }
  0x44   : > { %938 = dma.done.wait (%p44_p1), [#allocation6], 4096  }
  0x45   : > { %940 = vsyncadd (%p44_p1), [#allocation6], 4294963200  ;;  %v348_v0 = vld [vmem:[#allocation7 + $0xf8] sm:$0xff]  ;;  %v347_v2 = vld [vmem:[#allocation7 + $0xf0] sm:$0xff]  ;;  %s1183_s25 = scalar_lea.vmem [#allocation8], %s1114_s12  ;;  %s692_s5 = smul.u32 152, %s1012_s19 }
  0x46   : > { %v332_v1 = vld [vmem:[#allocation7 + $0x78] sm:$0xff]  ;;  %693 = vmatpush.msra.mxu2 %v348_v0  ;;  %v331_v3 = vld [vmem:[#allocation7 + $0x70] sm:$0xff]  ;;  %v346_v4 = vld [vmem:[#allocation7 + $0xe8] sm:$0xff]  ;;  %349 = vmatpush.msra.mxu0 %v348_v0  ;;  %s571_s19 = sshll.u32 %s1183_s25, 4  ;;  %s559_s24 = scalar_lea.sflag [#allocation4], %s1111_s2  ;;  %s572_s19 = int_to_ptr.vmem [resolvable:$true] %s571_s19 }
  0x47   : > { %423 = vmatpush.msra.mxu1 %v332_v1  ;;  %v330_v5 = vld [vmem:[#allocation7 + $0x68] sm:$0xff]  ;;  %709 = vmatpush.msra.mxu3 %v332_v1  ;;  %v345_v6 = vld [vmem:[#allocation7 + $0xe0] sm:$0xff]  ;;  %v344_v8 = vld [vmem:[#allocation7 + $0xd8] sm:$0xff]  ;;  %s570_s7 = scalar_lea.hbm %s1261_s4, %s692_s5  ;;  %s905_s12 = scalar_lea.hbm %s1261_s4, 304 }
  0x48   : > { %694 = vmatpush.msra.mxu2 %v347_v2  ;;  %v329_v7 = vld [vmem:[#allocation7 + $0x60] sm:$0xff]  ;;  %350 = vmatpush.msra.mxu0 %v347_v2  ;;  %v328_v9 = vld [vmem:[#allocation7 + $0x58] sm:$0xff]  ;;  %v343_v10 = vld [vmem:[#allocation7 + $0xd0] sm:$0xff]  ;;  %s573_s20 = sshll.u32 %s570_s7, 4  ;;  %s574_s20 = int_to_ptr.hbm [resolvable:$true] %s573_s20 }
  0x49   : > { %424 = vmatpush.msra.mxu1 %v331_v3  ;;  %710 = vmatpush.msra.mxu3 %v331_v3  ;;  %v327_v11 = vld [vmem:[#allocation7 + $0x50] sm:$0xff]  ;;  %v342_v12 = vld [vmem:[#allocation7 + $0xc8] sm:$0xff]  ;;  %v341_v14 = vld [vmem:[#allocation7 + $0xc0] sm:$0xff]  ;;  %s899_s27 = sshra.s32 %s574_s20, 4  ;;  %s900_s27 = int_to_ptr.hbm [resolvable:$true] %s899_s27 }
  0x4a   : > { %695 = vmatpush.msra.mxu2 %v346_v4  ;;  %351 = vmatpush.msra.mxu0 %v346_v4  ;;  %v326_v13 = vld [vmem:[#allocation7 + $0x48] sm:$0xff]  ;;  %v325_v15 = vld [vmem:[#allocation7 + $0x40] sm:$0xff]  ;;  %v340_v16 = vld [vmem:[#allocation7 + $0xb8] sm:$0xff]  ;;  %s901_s28 = scalar_lea.hbm %s900_s27, 152  ;;  %p906_p9 = scmp.lt.s32.totalorder %s900_s27, %s1261_s4 }
  0x4b   : > { %425 = vmatpush.msra.mxu1 %v330_v5  ;;  %711 = vmatpush.msra.mxu3 %v330_v5  ;;  %v324_v17 = vld [vmem:[#allocation7 + $0x38] sm:$0xff]  ;;  %v339_v18 = vld [vmem:[#allocation7 + $0xb0] sm:$0xff]  ;;  %v338_v20 = vld [vmem:[#allocation7 + $0xa8] sm:$0xff]  ;;  %p902_p1 = scmp.ne.s32.totalorder %s900_s27, %s901_s28  ;;  %p907_p10 = scmp.lt.s32.totalorder %s905_s12, %s901_s28 }
  0x4c   : > { %696 = vmatpush.msra.mxu2 %v345_v6  ;;  %352 = vmatpush.msra.mxu0 %v345_v6  ;;  %v323_v19 = vld [vmem:[#allocation7 + $0x30] sm:$0xff]  ;;  %v322_v21 = vld [vmem:[#allocation7 + $0x28] sm:$0xff]  ;;  %v337_v22 = vld [vmem:[#allocation7 + $0xa0] sm:$0xff] }
  0x4d   : > { %426 = vmatpush.msra.mxu1 %v329_v7  ;;  %712 = vmatpush.msra.mxu3 %v329_v7  ;;  %v321_v23 = vld [vmem:[#allocation7 + $0x20] sm:$0xff]  ;;  %v336_v24 = vld [vmem:[#allocation7 + $0x98] sm:$0xff]  ;;  %v335_v26 = vld [vmem:[#allocation7 + $0x90] sm:$0xff]  ;;  %p903_p4 = pnand %p902_p1, %p1061_p7  ;;  %p908_p11 = por %p907_p10, %p906_p9 }
  0x4e   : > { %697 = vmatpush.msra.mxu2 %v344_v8  ;;  %353 = vmatpush.msra.mxu0 %v344_v8  ;;  %v320_v25 = vld [vmem:[#allocation7 + $0x18] sm:$0xff]  ;;  %v319_v27 = vld [vmem:[#allocation7 + $0x10] sm:$0xff]  ;;  %v334_v28 = vld [vmem:[#allocation7 + $0x88] sm:$0xff] }
  0x4f   : > { %427 = vmatpush.msra.mxu1 %v328_v9  ;;  %713 = vmatpush.msra.mxu3 %v328_v9  ;;  %v318_v29 = vld [vmem:[#allocation7 + $0x8] sm:$0xff]  ;;  %v333_v30 = vld [vmem:[#allocation7 + $0x80] sm:$0xff]  ;;  %v307_v32 = vld [vmem:[%s1126_s23 + $0x48] sm:$0xff]  ;;  %p904_p8 = pneg %p903_p4 }
  0x50   : > { %698 = vmatpush.msra.mxu2 %v343_v10  ;;  %354 = vmatpush.msra.mxu0 %v343_v10  ;;  %v317_v31 = vld [vmem:[#allocation7] sm:$0xff]  ;;  %v298_v34 = vld [vmem:[%s1126_s23] sm:$0xff]  ;;  %v299_v38 = vld [vmem:[%s1126_s23 + $0x8] sm:$0xff] }
  0x51   : > { %428 = vmatpush.msra.mxu1 %v327_v11  ;;  %714 = vmatpush.msra.mxu3 %v327_v11  ;;  %v279_v33 = vld [vmem:[%s1118_s14] sm:$0xff]  ;;  %v289_v35 = vld [vmem:[%s1118_s14 + $0x50] sm:$0xff]  ;;  %v280_v37 = vld [vmem:[%s1118_s14 + $0x8] sm:$0xff]  ;;  %p909_p2 = pnand %p908_p11, %p904_p8 }
  0x52   : > { %699 = vmatpush.msra.mxu2 %v342_v12  ;;  %355 = vmatpush.msra.mxu0 %v342_v12  ;;  %v308_v36 = vld [vmem:[%s1126_s23 + $0x50] sm:$0xff]  ;;  %v290_v39 = vld [vmem:[%s1118_s14 + $0x58] sm:$0xff]  ;;  %v309_v40 = vld [vmem:[%s1126_s23 + $0x58] sm:$0xff] }
  0x53   : > { %429 = vmatpush.msra.mxu1 %v326_v13  ;;  %715 = vmatpush.msra.mxu3 %v326_v13  ;;  %v281_v41 = vld [vmem:[%s1118_s14 + $0x10] sm:$0xff]  ;;  %v300_v42 = vld [vmem:[%s1126_s23 + $0x10] sm:$0xff]  ;;  %v282_v45 = vld [vmem:[%s1118_s14 + $0x18] sm:$0xff] }
  0x54   : > { %700 = vmatpush.msra.mxu2 %v341_v14  ;;  %356 = vmatpush.msra.mxu0 %v341_v14  ;;  %v291_v43 = vld [vmem:[%s1118_s14 + $0x60] sm:$0xff]  ;;  %v310_v44 = vld [vmem:[%s1126_s23 + $0x60] sm:$0xff]  ;;  %v301_v46 = vld [vmem:[%s1126_s23 + $0x18] sm:$0xff] }
  0x55   : > { %430 = vmatpush.msra.mxu1 %v325_v15  ;;  %716 = vmatpush.msra.mxu3 %v325_v15  ;;  %v292_v47 = vld [vmem:[%s1118_s14 + $0x68] sm:$0xff]  ;;  %v311_v48 = vld [vmem:[%s1126_s23 + $0x68] sm:$0xff]  ;;  %v283_v49 = vld [vmem:[%s1118_s14 + $0x20] sm:$0xff] }
  0x56   : > { %701 = vmatpush.msra.mxu2 %v340_v16  ;;  %357 = vmatpush.msra.mxu0 %v340_v16  ;;  %v302_v50 = vld [vmem:[%s1126_s23 + $0x20] sm:$0xff]  ;;  %v312_v52 = vld [vmem:[%s1126_s23 + $0x70] sm:$0xff]  ;;  %v284_v53 = vld [vmem:[%s1118_s14 + $0x28] sm:$0xff] }
  0x57   : > { %431 = vmatpush.msra.mxu1 %v324_v17  ;;  %717 = vmatpush.msra.mxu3 %v324_v17  ;;  %v293_v51 = vld [vmem:[%s1118_s14 + $0x70] sm:$0xff]  ;;  %v303_v54 = vld [vmem:[%s1126_s23 + $0x28] sm:$0xff]  ;;  %v313_v56 = vld [vmem:[%s1126_s23 + $0x78] sm:$0xff] }
  0x58   : > { %702 = vmatpush.msra.mxu2 %v339_v18  ;;  %358 = vmatpush.msra.mxu0 %v339_v18  ;;  %v294_v55 = vld [vmem:[%s1118_s14 + $0x78] sm:$0xff]  ;;  %v285_v57 = vld [vmem:[%s1118_s14 + $0x30] sm:$0xff]  ;;  %v304_v58 = vld [vmem:[%s1126_s23 + $0x30] sm:$0xff] }
  0x59   : > { %432 = vmatpush.msra.mxu1 %v323_v19  ;;  %718 = vmatpush.msra.mxu3 %v323_v19  ;;  %v295_v59 = vld [vmem:[%s1118_s14 + $0x80] sm:$0xff]  ;;  %v314_v60 = vld [vmem:[%s1126_s23 + $0x80] sm:$0xff]  ;;  %v286_v61 = vld [vmem:[%s1118_s14 + $0x38] sm:$0xff] }
  0x5a   : > { %703 = vmatpush.msra.mxu2 %v338_v20  ;;  %359 = vmatpush.msra.mxu0 %v338_v20  ;;  %v305_v62 = vld [vmem:[%s1126_s23 + $0x38] sm:$0xff]  ;;  %v315_v0 = vld [vmem:[%s1126_s23 + $0x88] sm:$0xff]  ;;  %v287_v1 = vld [vmem:[%s1118_s14 + $0x40] sm:$0xff] }
  0x5b   : > { %433 = vmatpush.msra.mxu1 %v322_v21  ;;  %719 = vmatpush.msra.mxu3 %v322_v21  ;;  %v296_v63 = vld [vmem:[%s1118_s14 + $0x88] sm:$0xff]  ;;  %v306_v2 = vld [vmem:[%s1126_s23 + $0x40] sm:$0xff]  ;;  %v316_v4 = vld [vmem:[%s1126_s23 + $0x90] sm:$0xff] }
  0x5c   : > { %704 = vmatpush.msra.mxu2 %v337_v22  ;;  %360 = vmatpush.msra.mxu0 %v337_v22  ;;  %v297_v3 = vld [vmem:[%s1118_s14 + $0x90] sm:$0xff]  ;;  %v288_v5 = vld [vmem:[%s1118_s14 + $0x48] sm:$0xff] }
  0x5d   : > { %434 = vmatpush.msra.mxu1 %v321_v23  ;;  %720 = vmatpush.msra.mxu3 %v321_v23  ;;  %v1177_v7 = vld [vmem:[%s1260_s3] ss:$0 sm:$0xff] }
  0x5e   : > { %705 = vmatpush.msra.mxu2 %v336_v24  ;;  %361 = vmatpush.msra.mxu0 %v336_v24 }
  0x5f   : > { %435 = vmatpush.msra.mxu1 %v320_v25  ;;  %721 = vmatpush.msra.mxu3 %v320_v25 }
  0x60   : > { %706 = vmatpush.msra.mxu2 %v335_v26  ;;  %362 = vmatpush.msra.mxu0 %v335_v26 }
  0x61   : > { %436 = vmatpush.msra.mxu1 %v319_v27  ;;  %722 = vmatpush.msra.mxu3 %v319_v27 }
  0x62   : > { %707 = vmatpush.msra.mxu2 %v334_v28  ;;  %363 = vmatpush.msra.mxu0 %v334_v28 }
  0x63   : > { %437 = vmatpush.msra.mxu1 %v318_v29  ;;  %723 = vmatpush.msra.mxu3 %v318_v29 }
  0x64   : > { %708 = vmatpush.msra.mxu2 %v333_v30  ;;  %364 = vmatpush.msra.mxu0 %v333_v30 }
  0x65   : > { %438 = vmatpush.msra.mxu1 %v317_v31  ;;  %392 = vmatmul.f32.vlgmr.msra.gmra.mxu2 %v307_v32 }
  0x66   : > { %439 = vmatmul.f32.vlgmr.msra.gmra.mxu1 %v279_v33  ;;  %724 = vmatpush.msra.mxu3 %v317_v31 }
  0x67   : > { %365 = vmatmul.f32.vlgmr.msra.gmra.mxu0 %v298_v34  ;;  %469 = vmatmul.f32.vlgmr.msra.gmra.mxu3 %v289_v35 }
  0x6d   : > { %395 = vmatmul.f32.gmra.mxu2 %v308_v36 }
  0x6e   : > { %442 = vmatmul.f32.gmra.mxu1 %v280_v37 }
  0x6f   : > { %368 = vmatmul.f32.gmra.mxu0 %v299_v38  ;;  %472 = vmatmul.f32.gmra.mxu3 %v290_v39 }
  0x75   : > { %398 = vmatmul.f32.gmra.mxu2 %v309_v40 }
  0x76   : > { %445 = vmatmul.f32.gmra.mxu1 %v281_v41 }
  0x77   : > { %371 = vmatmul.f32.gmra.mxu0 %v300_v42  ;;  %475 = vmatmul.f32.gmra.mxu3 %v291_v43 }
  0x7d   : > { %401 = vmatmul.f32.gmra.mxu2 %v310_v44 }
  0x7e   : > { %448 = vmatmul.f32.gmra.mxu1 %v282_v45 }
  0x7f   : > { %374 = vmatmul.f32.gmra.mxu0 %v301_v46  ;;  %478 = vmatmul.f32.gmra.mxu3 %v292_v47 }
  0x85   : > { %404 = vmatmul.f32.gmra.mxu2 %v311_v48 }
  0x86   : > { %451 = vmatmul.f32.gmra.mxu1 %v283_v49 }
  0x87   : > { %377 = vmatmul.f32.gmra.mxu0 %v302_v50  ;;  %481 = vmatmul.f32.gmra.mxu3 %v293_v51 }
  0x8d   : > { %407 = vmatmul.f32.gmra.mxu2 %v312_v52 }
  0x8e   : > { %454 = vmatmul.f32.gmra.mxu1 %v284_v53 }
  0x8f   : > { %380 = vmatmul.f32.gmra.mxu0 %v303_v54  ;;  %484 = vmatmul.f32.gmra.mxu3 %v294_v55 }
  0x95   : > { %410 = vmatmul.f32.gmra.mxu2 %v313_v56 }
  0x96   : > { %457 = vmatmul.f32.gmra.mxu1 %v285_v57 }
  0x97   : > { %383 = vmatmul.f32.gmra.mxu0 %v304_v58  ;;  %487 = vmatmul.f32.gmra.mxu3 %v295_v59 }
  0x9d   : > { %413 = vmatmul.f32.gmra.mxu2 %v314_v60 }
  0x9e   : > { %460 = vmatmul.f32.gmra.mxu1 %v286_v61 }
  0x9f   : > { %386 = vmatmul.f32.gmra.mxu0 %v305_v62  ;;  %490 = vmatmul.f32.gmra.mxu3 %v296_v63 }
  0xa5   : > { %416 = vmatmul.f32.gmra.mxu2 %v315_v0 }
  0xa6   : > { %463 = vmatmul.f32.gmra.mxu1 %v287_v1 }
  0xa7   : > { %389 = vmatmul.f32.gmra.mxu0 %v306_v2  ;;  %493 = vmatmul.f32.gmra.mxu3 %v297_v3 }
  0xad   : > { %419 = vmatmul.f32.gmra.mxu2 %v316_v4 }
  0xae   : > { %466 = vmatmul.f32.gmra.mxu1 %v288_v5 }
  0xe3   : > { %v440_v6 = vpop.f32.mrf.mxu1 }
  0xe4   : > { %v366_v8 = vpop.f32.mrf.mxu0 }
  0xe5   : > { %v441_v9 = vadd.f32 %v440_v6, %v366_v8 }
  0xe7   : > { %v501_v10 = vadd.f32 %v1177_v7, %v441_v9 }
  0xe8   : > { %v1180_v11 = vpop.f32.mrf.mxu2 }
  0xe9   : > { %v520_v12 = vmax.f32 %v501_v10, 0.0 }
  0xea   : > { %v470_v14 = vpop.f32.mrf.mxu3 }
  0xeb   : > { %v443_v13 = vpop.f32.mrf.mxu1  ;;  %539 = vst [vmem:[%s1183_s25] sm:$0xff] %v520_v12 }
  0xec   : > { %v369_v15 = vpop.f32.mrf.mxu0 }
  0xed   : > { %v444_v16 = vadd.f32 %v443_v13, %v369_v15 }
  0xef   : > { %v502_v17 = vadd.f32 %v1177_v7, %v444_v16 }
  0xf0   : > { %v396_v18 = vpop.f32.mrf.mxu2 }
  0xf1   : > { %v521_v19 = vmax.f32 %v502_v17, 0.0  ;;  %v471_v20 = vadd.f32 %v470_v14, %v396_v18 }
  0xf2   : > { %v473_v22 = vpop.f32.mrf.mxu3 }
  0xf3   : > { %v446_v21 = vpop.f32.mrf.mxu1  ;;  %540 = vst [vmem:[%s1183_s25 + $0x8] sm:$0xff] %v521_v19  ;;  %v511_v23 = vadd.f32 %v1177_v7, %v471_v20 }
  0xf4   : > { %v372_v24 = vpop.f32.mrf.mxu0 }
  0xf5   : > { %v530_v25 = vmax.f32 %v511_v23, 0.0  ;;  %v447_v26 = vadd.f32 %v446_v21, %v372_v24 }
  0xf7   : > { %549 = vst [vmem:[%s1183_s25 + $0x50] sm:$0xff] %v530_v25  ;;  %v503_v27 = vadd.f32 %v1177_v7, %v447_v26 }
  0xf8   : > { %v399_v28 = vpop.f32.mrf.mxu2 }
  0xf9   : > { %v522_v29 = vmax.f32 %v503_v27, 0.0  ;;  %v474_v30 = vadd.f32 %v473_v22, %v399_v28 }
  0xfa   : > { %v476_v32 = vpop.f32.mrf.mxu3 }
  0xfb   : > { %v449_v31 = vpop.f32.mrf.mxu1  ;;  %541 = vst [vmem:[%s1183_s25 + $0x10] sm:$0xff] %v522_v29  ;;  %v512_v33 = vadd.f32 %v1177_v7, %v474_v30 }
  0xfc   : > { %v375_v34 = vpop.f32.mrf.mxu0 }
  0xfd   : > { %v531_v35 = vmax.f32 %v512_v33, 0.0  ;;  %v450_v36 = vadd.f32 %v449_v31, %v375_v34 }
  0xff   : > { %550 = vst [vmem:[%s1183_s25 + $0x58] sm:$0xff] %v531_v35  ;;  %v504_v37 = vadd.f32 %v1177_v7, %v450_v36 }
 0x100   : > { %v402_v38 = vpop.f32.mrf.mxu2 }
 0x101   : > { %v523_v39 = vmax.f32 %v504_v37, 0.0  ;;  %v477_v40 = vadd.f32 %v476_v32, %v402_v38 }
 0x102   : > { %v479_v42 = vpop.f32.mrf.mxu3 }
 0x103   : > { %v452_v41 = vpop.f32.mrf.mxu1  ;;  %542 = vst [vmem:[%s1183_s25 + $0x18] sm:$0xff] %v523_v39  ;;  %v513_v43 = vadd.f32 %v1177_v7, %v477_v40 }
 0x104   : > { %v378_v44 = vpop.f32.mrf.mxu0 }
 0x105   : > { %v532_v45 = vmax.f32 %v513_v43, 0.0  ;;  %v453_v46 = vadd.f32 %v452_v41, %v378_v44 }
 0x107   : > { %551 = vst [vmem:[%s1183_s25 + $0x60] sm:$0xff] %v532_v45  ;;  %v505_v47 = vadd.f32 %v1177_v7, %v453_v46 }
 0x108   : > { %v405_v48 = vpop.f32.mrf.mxu2 }
 0x109   : > { %v524_v49 = vmax.f32 %v505_v47, 0.0  ;;  %v480_v50 = vadd.f32 %v479_v42, %v405_v48 }
 0x10a   : > { %v482_v52 = vpop.f32.mrf.mxu3 }
 0x10b   : > { %v455_v51 = vpop.f32.mrf.mxu1  ;;  %543 = vst [vmem:[%s1183_s25 + $0x20] sm:$0xff] %v524_v49  ;;  %v514_v53 = vadd.f32 %v1177_v7, %v480_v50 }
 0x10c   : > { %v381_v54 = vpop.f32.mrf.mxu0 }
 0x10d   : > { %v533_v55 = vmax.f32 %v514_v53, 0.0  ;;  %v456_v56 = vadd.f32 %v455_v51, %v381_v54 }
 0x10f   : > { %552 = vst [vmem:[%s1183_s25 + $0x68] sm:$0xff] %v533_v55  ;;  %v506_v57 = vadd.f32 %v1177_v7, %v456_v56 }
 0x110   : > { %v408_v58 = vpop.f32.mrf.mxu2 }
 0x111   : > { %v525_v59 = vmax.f32 %v506_v57, 0.0  ;;  %v483_v60 = vadd.f32 %v482_v52, %v408_v58 }
 0x112   : > { %v485_v62 = vpop.f32.mrf.mxu3 }
 0x113   : > { %v458_v61 = vpop.f32.mrf.mxu1  ;;  %544 = vst [vmem:[%s1183_s25 + $0x28] sm:$0xff] %v525_v59  ;;  %v515_v63 = vadd.f32 %v1177_v7, %v483_v60 }
 0x114   : > { %v384_v0 = vpop.f32.mrf.mxu0 }
 0x115   : > { %v534_v1 = vmax.f32 %v515_v63, 0.0  ;;  %v459_v2 = vadd.f32 %v458_v61, %v384_v0 }
 0x117   : > { %553 = vst [vmem:[%s1183_s25 + $0x70] sm:$0xff] %v534_v1  ;;  %v507_v3 = vadd.f32 %v1177_v7, %v459_v2 }
 0x118   : > { %v411_v4 = vpop.f32.mrf.mxu2 }
 0x119   : > { %v526_v5 = vmax.f32 %v507_v3, 0.0  ;;  %v486_v6 = vadd.f32 %v485_v62, %v411_v4 }
 0x11a   : > { %v488_v9 = vpop.f32.mrf.mxu3 }
 0x11b   : > { %v461_v8 = vpop.f32.mrf.mxu1  ;;  %545 = vst [vmem:[%s1183_s25 + $0x30] sm:$0xff] %v526_v5  ;;  %v516_v10 = vadd.f32 %v1177_v7, %v486_v6 }
 0x11c   : > { %v387_v12 = vpop.f32.mrf.mxu0 }
 0x11d   : > { %v535_v13 = vmax.f32 %v516_v10, 0.0  ;;  %v462_v14 = vadd.f32 %v461_v8, %v387_v12 }
 0x11f   : > { %554 = vst [vmem:[%s1183_s25 + $0x78] sm:$0xff] %v535_v13  ;;  %v508_v15 = vadd.f32 %v1177_v7, %v462_v14 }
 0x120   : > { %v414_v16 = vpop.f32.mrf.mxu2 }
 0x121   : > { %v527_v17 = vmax.f32 %v508_v15, 0.0  ;;  %v489_v18 = vadd.f32 %v488_v9, %v414_v16 }
 0x122   : > { %v491_v22 = vpop.f32.mrf.mxu3 }
 0x123   : > { %v464_v19 = vpop.f32.mrf.mxu1  ;;  %546 = vst [vmem:[%s1183_s25 + $0x38] sm:$0xff] %v527_v17  ;;  %v517_v20 = vadd.f32 %v1177_v7, %v489_v18 }
 0x124   : > { %v390_v21 = vpop.f32.mrf.mxu0 }
 0x125   : > { %v536_v23 = vmax.f32 %v517_v20, 0.0  ;;  %v465_v24 = vadd.f32 %v464_v19, %v390_v21 }
 0x127   : > { %555 = vst [vmem:[%s1183_s25 + $0x80] sm:$0xff] %v536_v23  ;;  %v509_v25 = vadd.f32 %v1177_v7, %v465_v24 }
 0x128   : > { %v417_v26 = vpop.f32.mrf.mxu2 }
 0x129   : > { %v528_v27 = vmax.f32 %v509_v25, 0.0  ;;  %v492_v28 = vadd.f32 %v491_v22, %v417_v26 }
 0x12a   : > { %v494_v34 = vpop.f32.mrf.mxu3 }
 0x12b   : > { %v467_v29 = vpop.f32.mrf.mxu1  ;;  %547 = vst [vmem:[%s1183_s25 + $0x40] sm:$0xff] %v528_v27  ;;  %v518_v30 = vadd.f32 %v1177_v7, %v492_v28 }
 0x12c   : > { %v468_v31 = vadd.f32 %v467_v29, %v1180_v11 }
 0x12d   : > { %v537_v32 = vmax.f32 %v518_v30, 0.0 }
 0x12e   : > { %v510_v33 = vadd.f32 %v1177_v7, %v468_v31 }
 0x12f   : > { %556 = vst [vmem:[%s1183_s25 + $0x88] sm:$0xff] %v537_v32 }
 0x130   : > { %v529_v35 = vmax.f32 %v510_v33, 0.0  ;;  %v420_v36 = vpop.f32.mrf.mxu2 }
 0x131   : > { %v495_v37 = vadd.f32 %v494_v34, %v420_v36 }
 0x132   : > { %548 = vst [vmem:[%s1183_s25 + $0x48] sm:$0xff] %v529_v35 }
 0x133   : > { %v519_v11 = vadd.f32 %v1177_v7, %v495_v37 }
 0x135   : > { %v538_v38 = vmax.f32 %v519_v11, 0.0 }
 0x137   : > { %557 = vst [vmem:[%s1183_s25 + $0x90] sm:$0xff] %v538_v38 }
 0x138   : > { %912 = shalt.err (!%p909_p2)
}
 0x139   : > { %s964_s2 = smov 128   ;;  %s965_s17 = smov 8  }
 0x13a   : > { %736 = dma.vmem_to_hbm [thread:$0]  (%p1061_p7), %s572_s19, 2432, %s574_s20, %s559_s24, %s964_s2, %s964_s2, %s965_s17  }
 0x13b PF: > { %s588_s26 = sand.u32 1, %s947_s15   ;;  %p1278_p12 = scmp.ge.s32.totalorder %s959_s18, 2 }
 0x13c   : > { %s589_s23 = scalar_lea.sflag [#allocation4], %s588_s26 }
 0x13d   : > { %p750_p13 = pnand %p1278_p12, %p1026_p6 }
 0x13f   : > { %p751_p0 = pneg %p750_p13 }
 0x141   : > { %942 = dma.done.wait (%p751_p0), %s589_s23, 2432  }
 0x142   : > { %944 = vsyncadd (%p751_p0), %s589_s23, 4294964864  ;;  %s1279_s21 = sld [smem:[#allocation13_spill]]  ;;  %p20_p3 = scmp.ge.s32.totalorder %s1044_s29, 4  }
 0x143   : > { %s1280_s17 = sld [smem:[#allocation14_spill]]  ;;  %s1281_s15 = smov %s951_s16 }
 0x144   : > { %s1283_s18 = smov %s1044_s29  ;;  %22 = sbr.rel (!%p20_p3) target bundleno = 9 (0x9), region = 98 }
 0x148   : > { %s1282_s16 = smov %s1279_s21 }
 0x149   :  { %595 = vsyncpa [#allocation3], 1 }
 0x14a   :  { %597 = vsyncpa [#allocation3 + $0x1], 1 }
 0x14b   :  { %598 = vsyncpa [#allocation6], 1 }
 0x14c   :  { %600 = vsyncpa [#allocation6 + $0x1], 1 }
 0x14d   :  { %601 = vsyncpa [#allocation4], 1 }
 0x14e   :  { %603 = vsyncpa [#allocation4 + $0x1], 1 }

</bundles_post_ra>
